<compile_context>
chip_gen: v7x
topology: tpu7x:2x2x1
jax: 0.10.0
libtpu: 0.0.40
codegen_flags: <defaults>
</compile_context>

<pallas_src>
import jax
import jax.numpy as jnp
from jax.experimental import pallas as pl
from jax.experimental.pallas import tpu as pltpu


def _normalize_kernel(mean_ref, inv_std_ref, img_ref, out_ref):
    c = pl.program_id(2)                 # channel index (innermost grid axis)
    m = mean_ref[c]                      # f32 scalar from SMEM
    inv = inv_std_ref[c]                 # f32 scalar (1/std), precomputed
    x = img_ref[...].astype(jnp.float32)
    out_ref[...] = ((x - m) * inv).astype(out_ref.dtype)


def _divisors(m):
    return [d for d in range(1, m + 1) if m % d == 0]


def _pick_lane(hw, sub):
    """Largest 'nice' lane width (multiple of 128) dividing hw (hw % 128 == 0)."""
    cands = [l for l in (4096, 3584, 3072, 2560, 2048, 1792, 1536, 1280,
                         1024, 896, 768, 640, 512, 384, 256, 128)
             if hw % l == 0]
    nice = [l for l in cands if (hw // l) % sub == 0 or hw // l == 1]
    return max(nice) if nice else max(cands)


def _vmem_capacity_bytes():
    try:
        return int(pltpu.get_tpu_info().vmem_capacity_bytes)
    except Exception:
        return 64 << 20          # conservative: v7x per-TC VMEM


def _default_block_bytes():
    # Bigger blocks where VMEM is plentiful (v5e/v6e: 128 MiB), slightly
    # smaller on v7x-class parts (64 MiB per TC).
    return (8 << 20) if _vmem_capacity_bytes() >= (96 << 20) else (6 << 20)


def vgg_normalize(img, mean, std, *, block_bytes=None):
    """(img - mean[:, None, None]) / std[:, None, None]; img is NCHW."""
    n, c, h, w = img.shape
    hw = h * w
    itemsize = jnp.dtype(img.dtype).itemsize
    if block_bytes is None:
        block_bytes = _default_block_bytes()

    # Integer inputs promote to float32 (PyTorch broadcasting with float
    # mean/std promotes); float inputs keep their dtype.
    if jnp.issubdtype(img.dtype, jnp.floating):
        out_dtype = img.dtype
    else:
        out_dtype = jnp.float32
    out_itemsize = jnp.dtype(out_dtype).itemsize

    # Packed sublane multiple: 8 for f32, 16 for bf16, 32 for int8/fp8.
    sub = max(1, 32 // max(itemsize, 1))

    # Per-channel constants stay float32 in SMEM; fold the divide into a
    # reciprocal computed once in the wrapper (C elements -> free).
    mean_f32 = jnp.asarray(mean, jnp.float32).reshape(-1)
    inv_std_f32 = 1.0 / jnp.asarray(std, jnp.float32).reshape(-1)

    # Lane-dense layout: flatten spatial dims and pad to a multiple of 128 so
    # stores are never masked (then slice the pad off at the end).
    x = img.reshape(n, c, hw)
    hw_pad = ((hw + 127) // 128) * 128
    if hw_pad != hw:
        x = jnp.pad(x, ((0, 0), (0, 0), (0, hw_pad - hw)))
    lane = _pick_lane(hw_pad, sub)
    r = hw_pad // lane
    x = x.reshape(n, c, r, lane)

    # Split the sublane axis only if one channel plane exceeds the budget.
    plane_bytes = r * lane * itemsize
    if plane_bytes <= block_bytes:
        rb = r
    else:
        ok = [d for d in _divisors(r)
              if d % sub == 0 and d * lane * itemsize <= block_bytes]
        rb = max(ok) if ok else r           # fall back to full plane

    # Pack as many batch images as fit into one block (exact divisor of N so
    # the grid divides evenly).
    row_bytes = rb * lane * itemsize
    bn_ok = [d for d in _divisors(n) if d * row_bytes <= block_bytes]
    bn = max(bn_ok) if bn_ok else 1

    # VMEM budget: in + out blocks, double-buffered, plus compute/headroom.
    blk_in = bn * rb * lane * itemsize
    blk_out = bn * rb * lane * out_itemsize
    blk_f32 = bn * rb * lane * 4
    vmem_estimate = 2 * (blk_in + blk_out) + blk_f32 + (2 << 20)
    compiler_kwargs = dict(
        dimension_semantics=("parallel", "parallel", "parallel"))
    if vmem_estimate > (14 << 20):          # above v5e's default scoped limit
        cap = max(16 << 20, int(0.75 * _vmem_capacity_bytes()))
        compiler_kwargs["vmem_limit_bytes"] = min(vmem_estimate, cap)

    # Largest, evenly-splittable axes lead (v7x megacore balance); the
    # C(=3)-wide channel axis goes last.
    grid = (n // bn, r // rb, c)
    blk = (bn, 1, rb, lane)
    idx_map = lambda nb, rk, ci: (nb, ci, rk, 0)

    cost = pl.CostEstimate(
        flops=2 * n * c * hw,
        transcendentals=0,
        bytes_accessed=n * c * hw * (itemsize + out_itemsize))

    out = pl.pallas_call(
        _normalize_kernel,
        out_shape=jax.ShapeDtypeStruct((n, c, r, lane), out_dtype),
        grid=grid,
        in_specs=[
            pl.BlockSpec(memory_space=pltpu.MemorySpace.SMEM),   # mean  (C,) f32
            pl.BlockSpec(memory_space=pltpu.MemorySpace.SMEM),   # 1/std (C,) f32
            pl.BlockSpec(blk, idx_map),                          # image blocks
        ],
        out_specs=pl.BlockSpec(blk, idx_map),
        compiler_params=pltpu.CompilerParams(**compiler_kwargs),
        cost_estimate=cost,
    )(mean_f32, inv_std_f32, x)

    out = out.reshape(n, c, hw_pad)
    if hw_pad != hw:
        out = out[:, :, :hw]
    return out.reshape(n, c, h, w)


if __name__ == "__main__":
    # Standard VGG ImageNet normalization constants.
    mean = [0.485, 0.456, 0.406]
    std = [0.229, 0.224, 0.225]

    mean_ref = jnp.asarray(mean, jnp.float32).reshape(-1, 1, 1)
    std_ref = jnp.asarray(std, jnp.float32).reshape(-1, 1, 1)

    key = jax.random.PRNGKey(0)
    k1, k2 = jax.random.split(key)

    # Main check: lane-aligned spatial size.
    img = jax.random.uniform(k1, (2, 3, 16, 16), dtype=jnp.float32)
    out = jax.block_until_ready(vgg_normalize(img, mean, std))
    ref = (img - mean_ref) / std_ref
    assert out.shape == img.shape and out.dtype == img.dtype
    assert jnp.allclose(out, ref, atol=1e-5, rtol=1e-5)

    # Padded path: H*W not a multiple of 128 (e.g. a 7x7 feature map).
    img2 = jax.random.uniform(k2, (2, 3, 7, 7), dtype=jnp.float32)
    out2 = jax.block_until_ready(vgg_normalize(img2, mean, std))
    ref2 = (img2 - mean_ref) / std_ref
    assert out2.shape == img2.shape and out2.dtype == img2.dtype
    assert jnp.allclose(out2, ref2, atol=1e-5, rtol=1e-5)

    print("KERNEL_OK")
</pallas_src>

<mosaic_0001>
module attributes {stable_mosaic.version = 11 : i64} {
  func.func @_normalize_kernel(%arg0: i32, %arg1: i32, %arg2: i32, %arg3: memref<3xf32, #tpu.memory_space<smem>>, %arg4: memref<3xf32, #tpu.memory_space<smem>>, %arg5: memref<2x1x1x256xf32, #tpu.memory_space<vmem>>, %arg6: memref<2x1x1x256xf32, #tpu.memory_space<vmem>>) attributes {dimension_semantics = [#tpu.dimension_semantics<parallel>, #tpu.dimension_semantics<parallel>, #tpu.dimension_semantics<parallel>], iteration_bounds = array<i64: 1, 1, 3>, scalar_prefetch = 0 : i64, scratch_operands = 0 : i64, tpu.core_type = #tpu.core_type<tc>, window_params = [{transform_indices = @transform_0, window_bounds = array<i64: 3>}, {transform_indices = @transform_1, window_bounds = array<i64: 3>}, {transform_indices = @transform_2, window_bounds = array<i64: 2, 1, 1, 256>}, {transform_indices = @transform_3, window_bounds = array<i64: 2, 1, 1, 256>}]} {
    %0 = arith.index_cast %arg2 : i32 to index
    %1 = memref.load %arg3[%0] : memref<3xf32, #tpu.memory_space<smem>>
    %2 = arith.index_cast %arg2 : i32 to index
    %3 = memref.load %arg4[%2] : memref<3xf32, #tpu.memory_space<smem>>
    %c0 = arith.constant 0 : index
    %c0_0 = arith.constant 0 : index
    %c0_1 = arith.constant 0 : index
    %c0_2 = arith.constant 0 : index
    %4 = vector.load %arg5[%c0, %c0_0, %c0_1, %c0_2] : memref<2x1x1x256xf32, #tpu.memory_space<vmem>>, vector<2x1x1x256xf32>
    %5 = vector.broadcast %1 : f32 to vector<2x1x1x256xf32>
    %6 = arith.subf %4, %5 : vector<2x1x1x256xf32>
    %7 = vector.broadcast %3 : f32 to vector<2x1x1x256xf32>
    %8 = arith.mulf %6, %7 : vector<2x1x1x256xf32>
    %c0_3 = arith.constant 0 : index
    %c0_4 = arith.constant 0 : index
    %c0_5 = arith.constant 0 : index
    %c0_6 = arith.constant 0 : index
    %9 = vector.load %arg6[%c0_3, %c0_4, %c0_5, %c0_6] : memref<2x1x1x256xf32, #tpu.memory_space<vmem>>, vector<2x1x1x256xf32>
    tpu.vector_store %arg6[%c0_3, %c0_4, %c0_5, %c0_6], %8 {strides = array<i32>} : memref<2x1x1x256xf32, #tpu.memory_space<vmem>>, vector<2x1x1x256xf32>,
    return
  }
  func.func @transform_0(%arg0: i32, %arg1: i32, %arg2: i32) -> i32 {
    %c0_i32 = arith.constant 0 : i32
    %c0_i32_0 = arith.constant 0 : i32
    return %c0_i32 : i32
  }
  func.func @transform_1(%arg0: i32, %arg1: i32, %arg2: i32) -> i32 {
    %c0_i32 = arith.constant 0 : i32
    %c0_i32_0 = arith.constant 0 : i32
    return %c0_i32 : i32
  }
  func.func @transform_2(%arg0: i32, %arg1: i32, %arg2: i32) -> (i32, i32, i32, i32) {
    %c0_i32 = arith.constant 0 : i32
    %c0_i32_0 = arith.constant 0 : i32
    return %arg0, %arg2, %arg1, %c0_i32 : i32, i32, i32, i32
  }
  func.func @transform_3(%arg0: i32, %arg1: i32, %arg2: i32) -> (i32, i32, i32, i32) {
    %c0_i32 = arith.constant 0 : i32
    %c0_i32_0 = arith.constant 0 : i32
    return %arg0, %arg2, %arg1, %c0_i32 : i32, i32, i32, i32
  }
}

</mosaic_0001>

<bundles_post_ra>
// kernel: tpu_custom_call.1
= control target key start
LH: loop header
LB: loop body
LE: loop exit
PB: predicated region body
PF: predicated region fallthrough
CT: control target
= control target key end

     0   :  { %8 = vsyncpa [#allocation5], 0  ;;  %s913_s0 = inlined_call_operand.hbm [shape: f32[3], index: 0, kind: input, shape index: {}]   ;;  %s914_s1 = inlined_call_operand.vmem [shape: f32[3], index: 1, kind: input, shape index: {}]   ;;  %s915_s2 = inlined_call_operand.hbm [shape: f32[2,3,1,256], index: 2, kind: input, shape index: {}]   ;;  %s916_s3 = inlined_call_operand.hbm [shape: f32[2,3,1,256], index: 3, kind: output, shape index: {}]  }
   0x1   :  { %9 = vsyncpa [#allocation6], 0 }
   0x2   :  { %10 = vsyncpa [#allocation3], 0 }
   0x3   :  { %12 = vsyncpa [#allocation3 + $0x1], 0 }
   0x4   :  { %13 = vsyncpa [#allocation4], 0 }
   0x5   :  { %15 = vsyncpa [#allocation4 + $0x1], 0  ;;  %s691_s12 = smov 0   ;;  %s693_s13 = smov 0  }
   0x6   :  { %s695_s14 = smov 0   ;;  %s697_s15 = smov 0  }
   0x7   :  { %s699_s16 = smov 0   ;;  %s701_s17 = smov 0  }
   0x8 LB: > { %s401_s18 = sadd.s32 4294967295, %s659_s17   ;;  %s402_s19 = sadd.s32 4294967294, %s659_s17   ;;  %s659_s17 = sphi %s701_s17, %s21_s17   ;;  %s655_s16 = sphi %s699_s16, %s936_s16   ;;  %s651_s15 = sphi %s697_s15, %s935_s15   ;;  %s647_s14 = sphi %s695_s14, %s934_s14   ;;  %s643_s13 = sphi %s693_s13, %s933_s13   ;;  %s639_s12 = sphi %s691_s12, %s932_s12  }
   0x9   : > { %s93_s20 = sadd.s32 1, %s647_s14  ;;  %p100_p0 = scmp.ne.s32.totalorder %s647_s14, %s643_s13 }
   0xa   : > { %p101_p1 = scmp.eq.s32.totalorder %s659_s17, 0  ;;  %p106_p2 = scmp.ne.s32.totalorder %s643_s13, %s639_s12 }
   0xb   : > { %p729_p3 = scmp.eq.s32.totalorder %s401_s18, 0  ;;  %p134_p4 = scmp.eq.s32.totalorder %s401_s18, 2 }
   0xc   : > { %p102_p5 = por %p101_p1, %p100_p0  ;;  %p140_p6 = scmp.eq.s32.totalorder %s402_s19, 2 }
   0xd   : > { %s921_s21 = scalar_select %p729_p3, 1, 0 }
   0xe   : > { %p735_p7 = por %p729_p3, %p106_p2  ;;  %p739_p8 = por %p134_p4, %p100_p0 }
   0xf   : > { %p743_p9 = por %p140_p6, %p106_p2  ;;  %p403_p10 = scmp.ge.s32.totalorder %s659_s17, 1 }
  0x10   : > { %s922_s22 = scalar_select %p735_p7, 1, 0 }
  0x11   : > { %s923_s23 = scalar_select %p739_p8, 1, 0 }
  0x12   : > { %s924_s24 = scalar_select %p743_p9, 1, 0 }
  0x13   : > { %p147_p11 = scmp.lt.s32.totalorder %s659_s17, 4  ;;  %p451_p13 = scmp.lt.s32.totalorder %s659_s17, 3 }
  0x14   : > { %s169_s28 = sshll.u32 %s914_s1, 4  ;;  %s180_s4 = sand.u32 1, %s647_s14   ;;  %s170_s28 = int_to_ptr.vmem [resolvable:$true] %s169_s28 }
  0x15   : > { %p749_p12 = pnand %p403_p10, %p147_p11  ;;  %p759_p1 = pnand %p451_p13, %p102_p5 }
  0x16   : > { %s33_s5 = sadd.s32 1, %s655_s16  ;;  %s511_s8 = scalar_lea.hbm %s913_s0, 16 }
  0x17   : > { %p434_p0 = pneg %p749_p12  ;;  %p512_p4 = scmp.ne.s32.totalorder %s913_s0, %s511_s8 }
  0x18   : > { %p518_p11 = scmp.lt.u32.totalorder %s511_s8, %s913_s0 }
  0x19   : > { %p765_p2 = pnand %p434_p0, %p729_p3 }
  0x1b   : > { %p513_p5 = pneg %p765_p2 }
  0x1d   : > { %p514_p6 = pnand %p513_p5, %p512_p4 }
  0x1f   : > { %p515_p10 = pneg %p514_p6 }
  0x21   : > { %p520_p13 = pnand %p518_p11, %p515_p10 }
  0x23   : > { %523 = shalt.err (!%p520_p13)
}
  0x24   : > { %s661_s19 = smov [#allocation2]   ;;  %s524_s6 = scalar_lea.vmem %s170_s28, 16 }
  0x25   : > { %437 = dma.hbm_to_smem (!%p765_p2), %s913_s0, 16, %s661_s19, [#allocation5]  }
  0x26   : > { %p525_p0 = scmp.ne.s32.totalorder %s170_s28, %s524_s6  ;;  %p532_p7 = scmp.lt.s32.totalorder %s170_s28, %s170_s28 }
  0x27   : > { %p533_p4 = scmp.lt.s32.totalorder %s524_s6, %s524_s6 }
  0x28   : > { %p527_p9 = pnand %p525_p0, %p513_p5 }
  0x29   : > { %p534_p6 = por %p533_p4, %p532_p7 }
  0x2a   : > { %p528_p8 = pneg %p527_p9 }
  0x2c   : > { %p535_p3 = pnand %p534_p6, %p528_p8 }
  0x2e   : > { %538 = shalt.err (!%p535_p3)
}
  0x2f   : > { %s662_s7 = smov [#allocation7]   ;;  %p34_p10 = scmp.ge.s32.totalorder %s33_s5, 3 }
  0x30   : > { %440 = dma.vmem_to_smem (!%p765_p2), %s170_s28, 16, %s662_s7, [#allocation6]  }
  0x31   : > { %s407_s8 = sshll.u32 %s180_s4, 2  ;;  %s420_s9 = sshll.u32 %s655_s16, 5 }
  0x32   : > { %s938_s5 = smov (%p34_p10, %s33_s5), 0  ;;  %s797_s30 = scalar_lea.hbm %s915_s2, %s420_s9 }
  0x33   : > { %s87_s18 = ssub.s32 %s655_s16, %s938_s5  ;;  %s184_s19 = scalar_lea.vmem [#allocation8], %s407_s8 }
  0x34   : > { %s196_s28 = sshll.u32 %s184_s19, 4  ;;  %p91_p3 = scmp.eq.s32.totalorder %s87_s18, 0  ;;  %s801_s28 = int_to_ptr.vmem [resolvable:$true] %s196_s28 }
  0x35   : > { %s810_s27 = scalar_lea.sflag [#allocation3], %s180_s4  ;;  %s539_s6 = scalar_lea.hbm %s797_s30, 64 }
  0x36   : > { %s806_s26 = scalar_select %p91_p3, %s647_s14, %s93_s20  }
  0x37   : > { %p540_p7 = scmp.ne.s32.totalorder %s797_s30, %s539_s6  ;;  %p541_p8 = pneg %p759_p1 }
  0x38   : > { %s544_s9 = scalar_lea.hbm %s915_s2, 192  ;;  %p545_p5 = scmp.lt.u32.totalorder %s797_s30, %s915_s2 }
  0x39   : > { %p542_p9 = pnand %p541_p8, %p540_p7  ;;  %p546_p11 = scmp.lt.u32.totalorder %s544_s9, %s539_s6 }
  0x3a   : > { %p548_p0 = scmp.lt.u32.totalorder %s539_s6, %s797_s30 }
  0x3b   : > { %p543_p2 = pneg %p542_p9  ;;  %p547_p13 = por %p546_p11, %p545_p5 }
  0x3d   : > { %p549_p4 = por %p548_p0, %p547_p13 }
  0x3f   : > { %p550_p6 = pnand %p549_p4, %p543_p2 }
  0x41   : > { %553 = shalt.err (!%p550_p6)
}
  0x42   : > { %s554_s20 = scalar_lea.vmem %s801_s28, 64  ;;  %s663_s4 = smov [#allocation8]  }
  0x43   : > { %p555_p10 = scmp.ne.s32.totalorder %s801_s28, %s554_s20  ;;  %s559_s18 = sshll.u32 %s663_s4, 4  ;;  %s560_s18 = int_to_ptr.vmem [resolvable:$false] %s559_s18 }
  0x44   : > { %s561_s19 = scalar_lea.vmem %s560_s18, 128  ;;  %p562_p9 = scmp.lt.s32.totalorder %s801_s28, %s560_s18 }
  0x45   : > { %p557_p3 = pnand %p555_p10, %p541_p8  ;;  %p563_p5 = scmp.lt.s32.totalorder %s561_s19, %s554_s20 }
  0x47   : > { %p558_p7 = pneg %p557_p3  ;;  %p564_p11 = por %p563_p5, %p562_p9 }
  0x49   : > { %p565_p13 = pnand %p564_p11, %p558_p7 }
  0x4b   : > { %568 = shalt.err (!%p565_p13)
}
  0x4c   : > { %s664_s6 = smov 96   ;;  %s665_s7 = smov 32  }
  0x4d   : > { %s666_s8 = smov 2   ;;  %208 = sbr.rel (%p749_p12) target bundleno = 122 (0x7a), region = 32 }
  0x4e   : > { %444 = dma.hbm_to_vmem [thread:$0]  (!%p759_p1), %s797_s30, 64, %s801_s28, %s810_s27, %s664_s6, %s665_s7, %s666_s8  }
  0x4f   : > { %p928_p8 = scmp.ne.s32.totalorder (!%p749_p12), %s921_s21, 0 }
  0x54   : > { %622 = dma.done.wait (%p928_p8), [#allocation5], 16  }
  0x55   : > { %624 = vsyncadd (%p928_p8), [#allocation5], 4294967280 }
  0x56   : > { %626 = dma.done.wait (%p928_p8), [#allocation6], 16  }
  0x57   : > { %628 = vsyncadd (%p928_p8), [#allocation6], 4294967280  ;;  %s849_s9 = sand.u32 1, %s643_s13   ;;  %p929_p12 = scmp.ne.s32.totalorder %s922_s22, 0 }
  0x58   : > { %s413_s25 = sshll.u32 %s849_s9, 2  ;;  %s219_s29 = scalar_lea.sflag [#allocation3], %s849_s9 }
  0x59   : > { %s222_s30 = scalar_lea.vmem [#allocation8], %s413_s25 }
  0x5a   : > { %630 = dma.done.wait (%p929_p12), %s219_s29, 64  }
  0x5b   : > { %632 = vsyncadd (%p929_p12), %s219_s29, 4294967232 }
  0x5c   : > { %227 = sfence }
  0x5d   : > { %s248_s21 = sld [smem:[#allocation2 + %s651_s15]]  ;;  %v250_v0 = vld [vmem:[%s222_s30] sm:$0x3]  ;;  %v258_v1 = vlaneseq  ;;  %s245_s27 = scalar_lea.vmem [#allocation9], %s413_s25  ;;  %v251_v2 = vld [vmem:[%s222_s30 + $0x2] sm:$0x3] }
  0x5e   : > { %s249_s28 = sld [smem:[#allocation7 + %s651_s15]]  ;;  %s283_s10 = sshll.u32 %s245_s27, 4  ;;  %s860_s10 = int_to_ptr.vmem [resolvable:$true] %s283_s10 }
  0x5f   : > { %s421_s11 = sshll.u32 %s651_s15, 5  ;;  %vm260_vm0 = vcmp.lt.s32.totalorder %v258_v1, 256  ;;  %s265_s15 = scalar_lea.sflag [#allocation4], %s849_s9 }
  0x60   : > { %s865_s4 = scalar_lea.hbm %s916_s3, %s421_s11  ;;  %s569_s18 = scalar_lea.vmem %s860_s10, 64 }
  0x61   : > { %p570_p1 = scmp.ne.s32.totalorder %s860_s10, %s569_s18  ;;  %p930_p2 = scmp.ne.s32.totalorder %s923_s23, 0 }
  0x62   : > { %s667_s19 = smov [#allocation9]  }
  0x63   : > { %v252_v3 = vstv %s248_s21  ;;  %p571_p0 = pnand %p570_p1, %p930_p2  ;;  %s573_s6 = sshll.u32 %s667_s19, 4  ;;  %s574_s6 = int_to_ptr.vmem [resolvable:$false] %s573_s6 }
  0x64   : > { %v253_v4 = vsub.f32 %v250_v0, %v252_v3  ;;  %v255_v5 = vstv %s249_s28  ;;  %v254_v6 = vsub.f32 %v251_v2, %v252_v3  ;;  %s575_s7 = scalar_lea.vmem %s574_s6, 128  ;;  %p576_p6 = scmp.lt.s32.totalorder %s860_s10, %s574_s6 }
  0x65   : > { %p572_p4 = pneg %p571_p0  ;;  %p577_p10 = scmp.lt.s32.totalorder %s575_s7, %s569_s18 }
  0x66   : > { %v256_v7 = vmul.f32 %v255_v5, %v253_v4  ;;  %v257_v8 = vmul.f32 %v255_v5, %v254_v6 }
  0x67   : > { %p578_p3 = por %p577_p10, %p576_p6 }
  0x68   : > { %262 = vst.msk [vmem:[%s245_s27] sm:$0x3] %vm260_vm0, %v256_v7  ;;  %263 = vst.msk [vmem:[%s245_s27 + $0x2] sm:$0x3] %vm260_vm0, %v257_v8 }
  0x69   : > { %p579_p7 = pnand %p578_p3, %p572_p4 }
  0x6b   : > { %582 = shalt.err (!%p579_p7)
}
  0x6c   : > { %s583_s8 = scalar_lea.hbm %s865_s4, 64  ;;  %s587_s30 = scalar_lea.hbm %s916_s3, 192 }
  0x6d   : > { %p584_p9 = scmp.ne.s32.totalorder %s865_s4, %s583_s8  ;;  %p588_p13 = scmp.lt.u32.totalorder %s865_s4, %s916_s3 }
  0x6e   : > { %p589_p8 = scmp.lt.u32.totalorder %s587_s30, %s583_s8  ;;  %p591_p1 = scmp.lt.u32.totalorder %s583_s8, %s865_s4 }
  0x6f   : > { %p585_p5 = pnand %p584_p9, %p930_p2 }
  0x70   : > { %p590_p12 = por %p589_p8, %p588_p13 }
  0x71   : > { %p586_p11 = pneg %p585_p5 }
  0x72   : > { %p592_p0 = por %p591_p1, %p590_p12 }
  0x74   : > { %p593_p4 = pnand %p592_p0, %p586_p11 }
  0x76   : > { %596 = shalt.err (!%p593_p4)
}
  0x77   : > { %s668_s27 = smov 32   ;;  %s669_s11 = smov 96  }
  0x78   : > { %s670_s22 = smov 2  }
  0x79   : > { %432 = dma.vmem_to_hbm [thread:$0]  (%p930_p2), %s860_s10, 64, %s865_s4, %s265_s15, %s668_s27, %s669_s11, %s670_s22  }
  0x7a PF: > { %p454_p6 = scmp.ge.s32.totalorder %s659_s17, 2  ;;  %s298_s20 = sand.u32 1, %s639_s12  }
  0x7b   : > { %p931_p10 = scmp.ne.s32.totalorder %s924_s24, 0  ;;  %s299_s18 = scalar_lea.sflag [#allocation4], %s298_s20 }
  0x7d   : > { %p446_p3 = pnand %p454_p6, %p931_p10 }
  0x7f   : > { %634 = dma.done.wait (!%p446_p3), %s299_s18, 64  }
  0x80   : > { %636 = vsyncadd (!%p446_p3), %s299_s18, 4294967232  ;;  %s21_s17 = sadd.s32 1, %s659_s17   ;;  %s932_s12 = smov %s643_s13 }
  0x81   : > { %p18_p7 = scmp.ge.s32.totalorder %s21_s17, 5   ;;  %s933_s13 = smov %s647_s14 }
  0x82   : > { %s934_s14 = smov %s806_s26  ;;  %s935_s15 = smov %s655_s16 }
  0x83   : > { %s936_s16 = smov %s938_s5  ;;  %20 = sbr.rel (!%p18_p7) target bundleno = 8 (0x8), region = 87 }
  0x8a   :  { %304 = vsyncpa [#allocation3], 1 }
  0x8b   :  { %306 = vsyncpa [#allocation3 + $0x1], 1 }
  0x8c   :  { %307 = vsyncpa [#allocation4], 1 }
  0x8d   :  { %309 = vsyncpa [#allocation4 + $0x1], 1 }
  0x8e   :  { %310 = vsyncpa [#allocation5], 1 }
  0x8f   :  { %312 = vsyncpa [#allocation5 + $0x1], 1 }
  0x90   :  { %313 = vsyncpa [#allocation6], 1 }
  0x91   :  { %315 = vsyncpa [#allocation6 + $0x1], 1 }

</bundles_post_ra>
